<compile_context>
chip_gen: v7x
topology: tpu7x:2x2x1
jax: 0.10.0
libtpu: 0.0.40
codegen_flags: <defaults>
</compile_context>

<pallas_src>
import functools
import math

import jax
import jax.numpy as jnp
from jax.experimental import pallas as pl
from jax.experimental.pallas import tpu as pltpu


def _round_up(x, m):
    return ((x + m - 1) // m) * m


# ---------------------------------------------------------------------------
# Pass 1: support = X @ W   (bf16 operands, f32 accumulation)
# ---------------------------------------------------------------------------
def _xw_kernel(x_ref, w_ref, out_ref):
    out_ref[...] = jnp.dot(
        x_ref[...], w_ref[...], preferred_element_type=jnp.float32
    ).astype(out_ref.dtype)


# ---------------------------------------------------------------------------
# Pass 2: support2 = relu(adj @ support1 + b1) @ W2
#   grid = (row tiles, adj-column reduction).  Init/finalize via pl.when.
# ---------------------------------------------------------------------------
def _agg_relu_w2_kernel(adj_ref, s1_ref, b1_ref, w2_ref, out_ref, acc_ref):
    k = pl.program_id(1)

    @pl.when(k == 0)
    def _():
        acc_ref[...] = jnp.zeros_like(acc_ref)

    acc_ref[...] += jnp.dot(
        adj_ref[...], s1_ref[...], preferred_element_type=jnp.float32
    )

    @pl.when(k == pl.num_programs(1) - 1)
    def _():
        h1 = jnp.maximum(acc_ref[...] + b1_ref[...], 0.0)
        out_ref[...] = jnp.dot(
            h1.astype(w2_ref.dtype), w2_ref[...],
            preferred_element_type=jnp.float32,
        ).astype(out_ref.dtype)


# ---------------------------------------------------------------------------
# Pass 3: out = log_softmax(adj @ support2 + b2) over the valid class lanes
# ---------------------------------------------------------------------------
def _agg_logsoftmax_kernel(adj_ref, s2_ref, b2_ref, out_ref, acc_ref, *, nclass):
    k = pl.program_id(1)

    @pl.when(k == 0)
    def _():
        acc_ref[...] = jnp.zeros_like(acc_ref)

    acc_ref[...] += jnp.dot(
        adj_ref[...], s2_ref[...], preferred_element_type=jnp.float32
    )

    @pl.when(k == pl.num_programs(1) - 1)
    def _():
        logits = acc_ref[...] + b2_ref[...]
        lane = jax.lax.broadcasted_iota(jnp.int32, logits.shape, 1)
        valid = lane < nclass
        masked = jnp.where(valid, logits, -1e30)   # ignore padded class lanes
        m = jnp.max(masked, axis=1, keepdims=True)
        shifted = logits - m
        sumexp = jnp.sum(jnp.exp(masked - m), axis=1, keepdims=True)
        out_ref[...] = shifted - jnp.log(sumexp)


def gcn_forward(x, adj, w1, b1, w2, b2):
    """pygcn GCN forward (eval mode). x:[N,F], adj:[N,N], w:[in,out], b:[1,out]."""
    n, nfeat = x.shape
    nhid = w1.shape[1]
    nclass = w2.shape[1]

    # Row tile == adj-column reduction tile; modest size so double-buffered
    # adj tiles + accumulators fit every generation's scoped VMEM.
    tile = _round_up(n, 128) if n <= 256 else 256
    n_p = _round_up(n, tile)
    h_p = _round_up(nhid, 128)    # lane-dense hidden dim
    c_p = _round_up(nclass, 128)  # lane-dense class dim

    f32, bf16 = jnp.float32, jnp.bfloat16

    # Pad + cast once at the boundary (zero padding keeps the math exact;
    # padded class lanes are masked inside the log_softmax).
    x_p = jnp.zeros((n_p, nfeat), bf16).at[:n, :].set(x.astype(bf16))
    adj_p = jnp.zeros((n_p, n_p), bf16).at[:n, :n].set(adj.astype(bf16))
    w1_p = jnp.zeros((nfeat, h_p), bf16).at[:, :nhid].set(w1.astype(bf16))
    b1_p = jnp.zeros((1, h_p), f32).at[:, :nhid].set(b1.astype(f32))
    w2_p = jnp.zeros((h_p, c_p), bf16).at[:nhid, :nclass].set(w2.astype(bf16))
    b2_p = jnp.zeros((1, c_p), f32).at[:, :nclass].set(b2.astype(f32))

    grid_rows = n_p // tile
    grid_k = n_p // tile

    # TODO(synk): training-mode dropout (pltpu.prng_random_bits) not wired in;
    # this matches model.eval() where F.dropout is identity.

    # -- Pass 1: support1 = X @ W1 -------------------------------------------
    support1 = pl.pallas_call(
        _xw_kernel,
        out_shape=jax.ShapeDtypeStruct((n_p, h_p), bf16),
        grid=(grid_rows,),
        in_specs=[
            pl.BlockSpec((tile, nfeat), lambda i: (i, 0)),
            pl.BlockSpec((nfeat, h_p), lambda i: (0, 0)),
        ],
        out_specs=pl.BlockSpec((tile, h_p), lambda i: (i, 0)),
        compiler_params=pltpu.CompilerParams(
            dimension_semantics=("parallel",)),
    )(x_p, w1_p)

    # -- Pass 2: support2 = relu(adj @ support1 + b1) @ W2 --------------------
    support2 = pl.pallas_call(
        _agg_relu_w2_kernel,
        out_shape=jax.ShapeDtypeStruct((n_p, c_p), bf16),
        grid=(grid_rows, grid_k),
        in_specs=[
            pl.BlockSpec((tile, tile), lambda i, k: (i, k)),   # adj tile
            pl.BlockSpec((tile, h_p), lambda i, k: (k, 0)),    # support1 rows
            pl.BlockSpec((1, h_p), lambda i, k: (0, 0)),       # b1 (resident)
            pl.BlockSpec((h_p, c_p), lambda i, k: (0, 0)),     # W2 (resident)
        ],
        out_specs=pl.BlockSpec((tile, c_p), lambda i, k: (i, 0)),
        scratch_shapes=[pltpu.VMEM((tile, h_p), f32)],
        compiler_params=pltpu.CompilerParams(
            dimension_semantics=("parallel", "arbitrary")),
    )(adj_p, support1, b1_p, w2_p)

    # -- Pass 3: log_softmax(adj @ support2 + b2) -----------------------------
    out_p = pl.pallas_call(
        functools.partial(_agg_logsoftmax_kernel, nclass=nclass),
        out_shape=jax.ShapeDtypeStruct((n_p, c_p), f32),
        grid=(grid_rows, grid_k),
        in_specs=[
            pl.BlockSpec((tile, tile), lambda i, k: (i, k)),   # adj tile
            pl.BlockSpec((tile, c_p), lambda i, k: (k, 0)),    # support2 rows
            pl.BlockSpec((1, c_p), lambda i, k: (0, 0)),       # b2 (resident)
        ],
        out_specs=pl.BlockSpec((tile, c_p), lambda i, k: (i, 0)),
        scratch_shapes=[pltpu.VMEM((tile, c_p), f32)],
        compiler_params=pltpu.CompilerParams(
            dimension_semantics=("parallel", "arbitrary")),
    )(adj_p, support2, b2_p)

    return out_p[:n, :nclass]


def init_gc_params(key, in_features, out_features):
    """pygcn GraphConvolution.reset_parameters: uniform(-stdv, stdv), stdv=1/sqrt(out)."""
    stdv = 1.0 / math.sqrt(out_features)
    kw, kb = jax.random.split(key)
    w = jax.random.uniform(kw, (in_features, out_features), jnp.float32,
                           minval=-stdv, maxval=stdv)
    b = jax.random.uniform(kb, (1, out_features), jnp.float32,
                           minval=-stdv, maxval=stdv)
    return w, b


if __name__ == "__main__":
    N, NFEAT, NHID, NCLASS = 64, 32, 16, 8

    key = jax.random.PRNGKey(0)
    kx, kadj, k1, k2 = jax.random.split(key, 4)

    # Node features.
    x = jax.random.normal(kx, (N, NFEAT), jnp.float32)

    # Symmetric row-normalized adjacency with self-loops (typical GCN input).
    a = (jax.random.uniform(kadj, (N, N)) < 0.1).astype(jnp.float32)
    a = jnp.maximum(a, a.T) + jnp.eye(N, dtype=jnp.float32)
    adj = a / jnp.sum(a, axis=1, keepdims=True)

    w1, b1 = init_gc_params(k1, NFEAT, NHID)
    w2, b2 = init_gc_params(k2, NHID, NCLASS)

    out = gcn_forward(x, adj, w1, b1, w2, b2)
    jax.block_until_ready(out)

    # Sanity check against plain-JAX f32 reference (loose tolerance: the
    # kernel uses bf16 operands with f32 accumulation).
    h_ref = jnp.maximum(adj @ (x @ w1) + b1, 0.0)
    logits_ref = adj @ (h_ref @ w2) + b2
    ref = jax.nn.log_softmax(logits_ref, axis=1)

    assert out.shape == (N, NCLASS)
    assert bool(jnp.all(jnp.isfinite(out)))
    assert jnp.allclose(out, ref, atol=5e-2, rtol=5e-2), (
        f"max abs err {float(jnp.max(jnp.abs(out - ref)))}")

    print("KERNEL_OK")
</pallas_src>

<mosaic_0001>
module attributes {stable_mosaic.version = 11 : i64} {
  func.func @_xw_kernel(%arg0: i32, %arg1: memref<128x32xbf16, #tpu.memory_space<vmem>>, %arg2: memref<32x128xbf16, #tpu.memory_space<vmem>>, %arg3: memref<128x128xbf16, #tpu.memory_space<vmem>>) attributes {dimension_semantics = [#tpu.dimension_semantics<parallel>], iteration_bounds = array<i64: 1>, scalar_prefetch = 0 : i64, scratch_operands = 0 : i64, tpu.core_type = #tpu.core_type<tc>, window_params = [{transform_indices = @transform_0, window_bounds = array<i64: 128, 32>}, {pipeline_mode = #tpu.pipeline_mode<synchronous>, transform_indices = @transform_1, window_bounds = array<i64: 32, 128>}, {transform_indices = @transform_2, window_bounds = array<i64: 128, 128>}]} {
    %c0 = arith.constant 0 : index
    %c0_0 = arith.constant 0 : index
    %0 = vector.load %arg1[%c0, %c0_0] : memref<128x32xbf16, #tpu.memory_space<vmem>>, vector<128x32xbf16>
    %c0_1 = arith.constant 0 : index
    %c0_2 = arith.constant 0 : index
    %1 = vector.load %arg2[%c0_1, %c0_2] : memref<32x128xbf16, #tpu.memory_space<vmem>>, vector<32x128xbf16>
    %cst = arith.constant dense<0.000000e+00> : vector<128x128xf32>
    %2 = tpu.matmul %0, %1, %cst {dimension_numbers = #tpu.dot_dimension_numbers<[1], [0], [0], [1], [0, 0, 1, 1], [], []>} : vector<128x32xbf16>, vector<32x128xbf16>, vector<128x128xf32> -> vector<128x128xf32>
    %3 = arith.truncf %2 : vector<128x128xf32> to vector<128x128xbf16>
    %c0_3 = arith.constant 0 : index
    %c0_4 = arith.constant 0 : index
    %4 = vector.load %arg3[%c0_3, %c0_4] : memref<128x128xbf16, #tpu.memory_space<vmem>>, vector<128x128xbf16>
    tpu.vector_store %arg3[%c0_3, %c0_4], %3 {strides = array<i32>} : memref<128x128xbf16, #tpu.memory_space<vmem>>, vector<128x128xbf16>,
    return
  }
  func.func @transform_0(%arg0: i32) -> (i32, i32) {
    %c0_i32 = arith.constant 0 : i32
    %c0_i32_0 = arith.constant 0 : i32
    return %arg0, %c0_i32 : i32, i32
  }
  func.func @transform_1(%arg0: i32) -> (i32, i32) {
    %c0_i32 = arith.constant 0 : i32
    %c0_i32_0 = arith.constant 0 : i32
    %c0_i32_1 = arith.constant 0 : i32
    return %c0_i32, %c0_i32_0 : i32, i32
  }
  func.func @transform_2(%arg0: i32) -> (i32, i32) {
    %c0_i32 = arith.constant 0 : i32
    %c0_i32_0 = arith.constant 0 : i32
    return %arg0, %c0_i32 : i32, i32
  }
}

</mosaic_0001>

<bundles_post_ra>
// kernel: tpu_custom_call.1
= control target key start
LH: loop header
LB: loop body
LE: loop exit
PB: predicated region body
PF: predicated region fallthrough
CT: control target
= control target key end

     0   :  { %vm85_vm0 = vcmask 261120   ;;  %s539_s0 = inlined_call_operand.vmem [shape: bf16[128,32], index: 0, kind: input, shape index: {}]   ;;  %s540_s1 = inlined_call_operand.vmem [shape: bf16[32,128], index: 1, kind: input, shape index: {}]   ;;  %s541_s2 = inlined_call_operand.hbm [shape: bf16[128,128], index: 2, kind: output, shape index: {}]  }
   0x1   :  { %v437_v0 = vld [vmem:[%s540_s1] sm:$0xff]   ;;  %v438_v1 = vld [vmem:[%s540_s1 + $0x8] sm:$0xff]   ;;  %v443_v6 = vld [vmem:[%s539_s0 + $0x10] sm:$0xff]  }
   0x2   :  { %410 = vmatprep.subr.bf16.mxu0 %v437_v0  ;;  %430 = vmatprep.subr.bf16.mxu1 %v437_v0  ;;  %v439_v2 = vld [vmem:[%s539_s0] sm:$0xff]   ;;  %v441_v4 = vld [vmem:[%s539_s0 + $0x8] sm:$0xff]   ;;  %v444_v7 = vld [vmem:[%s539_s0 + $0x30] sm:$0xff]  }
   0x3   :  { %411 = vmatpush3.bf16.msra.mxu0 %v437_v0  ;;  %432 = vmatpush3.bf16.msra.mxu1 %v437_v0  ;;  %v440_v3 = vld [vmem:[%s539_s0 + $0x20] sm:$0xff]   ;;  %v442_v5 = vld [vmem:[%s539_s0 + $0x28] sm:$0xff]  }
   0x4   :  { %412 = vmatprep.subr.bf16.mxu0 %v438_v1  ;;  %431 = vmatprep.subr.bf16.mxu1 %v438_v1 }
   0x5   :  { %414 = vmatprep.mubr.msk.bf16.mxu0 %vm85_vm0, %v439_v2  ;;  %422 = vmatprep.mubr.msk.bf16.mxu1 %vm85_vm0, %v440_v3 }
   0x7   :  { %413 = vmatpush3.bf16.msra.mxu0 %v438_v1  ;;  %433 = vmatpush3.bf16.msra.mxu1 %v438_v1 }
   0xa   :  { %415 = vmatmul.mubr.msk.bf16.vlgmr.msra.gmra.mrb[0].mxu0 %vm85_vm0, %v441_v4  ;;  %423 = vmatmul.mubr.msk.bf16.vlgmr.msra.gmra.mrb[0].mxu1 %vm85_vm0, %v442_v5 }
   0xb   :  { %7 = vsyncpa [#allocation3], 0  ;;  %418 = vmatprep.mubr.msk.bf16.mxu0 %vm85_vm0, %v443_v6  ;;  %426 = vmatprep.mubr.msk.bf16.mxu1 %vm85_vm0, %v444_v7  ;;  %v445_v8 = vld [vmem:[%s539_s0 + $0x18] sm:$0xff]  }
   0xc   :  { %v446_v9 = vld [vmem:[%s539_s0 + $0x38] sm:$0xff]   ;;  %s471_s0 = smov [#allocation2]  }
   0xd   :  { %s292_s28 = sshll.u32 %s471_s0, 4  ;;  %s293_s28 = int_to_ptr.vmem [resolvable:$true] %s292_s28 }
   0xe   :  { %s447_s29 = scalar_lea.vmem %s293_s28, 1024  ;;  %p452_p1 = scmp.lt.s32.totalorder %s293_s28, %s293_s28 }
   0xf   :  { %p448_p0 = scmp.ne.s32.totalorder %s293_s28, %s447_s29  ;;  %p453_p2 = scmp.lt.s32.totalorder %s447_s29, %s447_s29 }
  0x11   :  { %p454_p3 = por %p453_p2, %p452_p1 }
  0x12   :  { %419 = vmatmul.mubr.msk.bf16.gmra.mrb[4].mxu0 %vm85_vm0, %v445_v8  ;;  %427 = vmatmul.mubr.msk.bf16.gmra.mrb[4].mxu1 %vm85_vm0, %v446_v9 }
  0x13   :  { %p455_p4 = pnand %p454_p3, %p448_p0 }
  0xdd   :  { %v416_v10 = vpop.f32.mrb[0].mxu0  ;;  %v424_v11 = vpop.f32.mrb[0].mxu1 }
  0xde   :  { %v144_v12 = vpop.f32.mrb[1].mxu0  ;;  %v176_v13 = vpop.f32.mrb[1].mxu1 }
  0xdf   :  { %v417_v14 = vpop.f32.mrb[2].mxu0  ;;  %v425_v15 = vpop.f32.mrb[2].mxu1 }
  0xe0   :  { %v361_v16 = vpack.c.bf16 %v417_v14, %v416_v10  ;;  %v381_v17 = vpack.c.bf16 %v425_v15, %v424_v11  ;;  %v147_v18 = vpop.f32.mrb[3].mxu0  ;;  %v179_v19 = vpop.f32.mrb[3].mxu1 }
  0xe1   :  { %v356_v20 = vpack.c.bf16 %v147_v18, %v144_v12  ;;  %v376_v21 = vpack.c.bf16 %v179_v19, %v176_v13 }
  0xe2   :  { %393 = vst [vmem:[#allocation2 + $0x8] sm:$0xff] %v361_v16   ;;  %397 = vst [vmem:[#allocation2 + $0x28] sm:$0xff] %v381_v17  }
  0xe3   :  { %357 = vst [vmem:[#allocation2] sm:$0xff] %v356_v20   ;;  %396 = vst [vmem:[#allocation2 + $0x20] sm:$0xff] %v376_v21  }
  0xe5   :  { %v420_v22 = vpop.f32.mrb[4].mxu0  ;;  %v428_v23 = vpop.f32.mrb[4].mxu1 }
  0xe6   :  { %v160_v24 = vpop.f32.mrb[5].mxu0  ;;  %v192_v25 = vpop.f32.mrb[5].mxu1 }
  0xe7   :  { %v421_v26 = vpop.f32.mrb[6].mxu0  ;;  %v429_v27 = vpop.f32.mrb[6].mxu1 }
  0xe8   :  { %v371_v28 = vpack.c.bf16 %v421_v26, %v420_v22  ;;  %v391_v29 = vpack.c.bf16 %v429_v27, %v428_v23  ;;  %v163_v30 = vpop.f32.mrb[7].mxu0  ;;  %v195_v31 = vpop.f32.mrb[7].mxu1 }
  0xe9   :  { %v366_v32 = vpack.c.bf16 %v163_v30, %v160_v24  ;;  %v386_v33 = vpack.c.bf16 %v195_v31, %v192_v25 }
  0xea   :  { %395 = vst [vmem:[#allocation2 + $0x18] sm:$0xff] %v371_v28   ;;  %399 = vst [vmem:[#allocation2 + $0x38] sm:$0xff] %v391_v29  }
  0xeb   :  { %394 = vst [vmem:[#allocation2 + $0x10] sm:$0xff] %v366_v32   ;;  %398 = vst [vmem:[#allocation2 + $0x30] sm:$0xff] %v386_v33  }
  0xec   :  { %458 = shalt.err (!%p455_p4)
}
  0xed   :  { %s459_s4 = scalar_lea.hbm %s541_s2, 1024 }
  0xee   :  { %p460_p5 = scmp.ne.s32.totalorder %s541_s2, %s459_s4  ;;  %p463_p6 = scmp.lt.u32.totalorder %s459_s4, %s541_s2 }
  0xf0   :  { %p465_p7 = pnand %p463_p6, %p460_p5 }
  0xf2   :  { %468 = shalt.err (!%p465_p7)
}
  0xf3   :  { %s472_s9 = smov 64   ;;  %s473_s10 = smov 4  }
  0xf4   :  { %298 = dma.vmem_to_hbm [thread:$0]  %s293_s28, 1024, %s541_s2, [#allocation3], %s472_s9, %s472_s9, %s473_s10  }
  0xf5   :  { %469 = dma.done.wait [#allocation3], 1024  }
  0xf6   :  { %470 = vsyncadd [#allocation3], 4294966272 }
  0xf7   :  { %302 = vsyncpa [#allocation3], 1 }

</bundles_post_ra>
